<compile_context>
chip_gen: v7x
topology: tpu7x:2x2x1
jax: 0.10.0
libtpu: 0.0.40
codegen_flags: <defaults>
</compile_context>

<pallas_src>
import functools

import jax
import jax.numpy as jnp
from jax import lax
from jax.experimental import pallas as pl
from jax.experimental.pallas import tpu as pltpu


def _grouper_kernel(qaug_ref, paug_ref, xf_ref, sub_ref, out_ref, *,
                    radius, K, block):
    qaug = qaug_ref[0]                      # (5, tN1)   f32  [q; ||q||^2; 1]
    paug = paug_ref[0]                      # (N2, 5)    f32  [-2p, 1, ||p||^2]
    xf = xf_ref[0]                          # (Dp, N2)   bf16 [xyz; feat; feat; 0pad]
    sub = sub_ref[0]                        # (Dp, tN1)  f32  [new; 0; cfeat; 0pad]
    n2 = paug.shape[0]
    tn1 = qaug.shape[1]

    # Pairwise squared distances with queries on the lane axis.  Every matmul in
    # this kernel is MXU-native (LHS contracts its lane axis, RHS its sublane
    # axis), so no value transposes are emitted anywhere.
    d2 = jnp.dot(paug, qaug, preferred_element_type=jnp.float32)    # (N2, tN1)

    in_ball = d2 < jnp.float32(radius * radius)                     # (N2, tN1) bool
    maskb = jnp.where(in_ball, 1.0, 0.0).astype(jnp.bfloat16)       # MXU operand

    # Ball-query rank: rank[j, i] = #{j' <= j : point j' inside query i's ball},
    # via blocked lower-triangular-ones matmuls on the MXU (which has plenty of
    # slack) instead of K serial min-extractions on the saturated VALU.
    bs = block
    g_blocks = n2 // bs
    ri = lax.broadcasted_iota(jnp.int32, (bs, bs), 0)
    ci = lax.broadcasted_iota(jnp.int32, (bs, bs), 1)
    ltri = jnp.where(ci <= ri, 1.0, 0.0).astype(jnp.bfloat16)       # (bs, bs)

    pieces = []
    boff = jnp.zeros((1, tn1), jnp.float32)
    for g in range(g_blocks):
        mg = maskb[g * bs:(g + 1) * bs, :]
        rg = jnp.dot(ltri, mg, preferred_element_type=jnp.float32) + boff
        pieces.append(rg)
        boff = jnp.max(rg, axis=0, keepdims=True)    # running prefix = block total
    rank = pieces[0] if g_blocks == 1 else jnp.concatenate(pieces, axis=0)
    cnt = boff                                       # (1, tN1) neighbours per query
    rk = jnp.where(in_ball, rank, 0.0)               # zero outside the ball -> exact one-hots

    # k-th neighbour = the point whose in-ball rank is k+1.  One-hot is a single
    # f32 compare+select and one bf16 cast; the gather runs on the MXU with bf16
    # operands / f32 accumulation.  Queries with fewer than k+1 neighbours are
    # fixed up *after* the matmul (replicate neighbour 0): (Dp, tN1) work
    # instead of an (N2, tN1) select.
    g0 = None
    for k in range(K):
        kf = jnp.float32(k + 1)
        oh = jnp.where(rk == kf, 1.0, 0.0).astype(jnp.bfloat16)     # (N2, tN1)
        gk = jnp.dot(xf, oh, preferred_element_type=jnp.float32)    # (Dp, tN1)
        if k == 0:
            # TODO(synk): queries with zero in-radius neighbours gather zeros
            # here; CUDA ball_query leaves such slots effectively unspecified
            # (never happens when new_xyz is a subset of xyz, e.g. FPS output).
            g0 = gk
            sel = gk
        else:
            sel = jnp.where(cnt >= kf, gk, g0)
        out_ref[0, k, :, :] = (sel - sub).astype(out_ref.dtype)


def _vmem_capacity_bytes():
    try:
        return int(pltpu.get_tpu_info().vmem_capacity_bytes)
    except Exception:
        return 128 * 1024 * 1024


def _pick_rank_block(n2):
    for bs in (512, 256, 128):
        if n2 % bs == 0:
            return bs
    return n2


def _working_set_bytes(t, n2, dp, k, bs):
    tmp = 12 * n2 * t                        # d2 / mask / rank / one-hot temporaries
    acc = 2 * dp * t * 4 + bs * bs * 2       # g0/sel accumulators + triangular matrix
    io = 2 * ((5 * t + dp * t) * 4 + k * dp * t * 2) \
        + 2 * (n2 * 5 * 4 + dp * n2 * 2)
    return tmp + acc + io


def _pick_tile_n1(n1, n2, dp, k, bs, cap, batch):
    budget = max(16 * 1024 * 1024, int(cap * 0.35))
    cands = [t for t in (1024, 512, 256, 128) if n1 % t == 0] or [n1]
    fits = [t for t in cands if _working_set_bytes(t, n2, dp, k, bs) <= budget] or [cands[-1]]
    best = fits[0]
    # v7x megacore: prefer an even total grid-step count when it is nearly free.
    if (batch * (n1 // best)) % 2 != 0:
        for t in fits:
            if (batch * (n1 // t)) % 2 == 0 and t * 2 >= best:
                return t
    return best


def edge_query_grouper(new_xyz, xyz, centroid_feature, feature, use_xyz,
                       *, radius, num_neighbours):
    """Forward pass of EdgeQueryGrouper. Returns (group_feature, group_xyz)."""
    assert radius > 0.0 and num_neighbours > 0
    new_xyz = jnp.asarray(new_xyz, jnp.float32)        # (B, 3, N1)
    xyz = jnp.asarray(xyz, jnp.float32)                # (B, 3, N2)
    B, _, N1 = new_xyz.shape
    N2 = xyz.shape[2]
    K = int(num_neighbours)

    if feature is not None:
        feat = jnp.asarray(feature, jnp.float32)               # (B, C, N2)
        cfeat = jnp.asarray(centroid_feature, jnp.float32)     # (B, C, N1)
        C = feat.shape[1]
    else:
        C = 1  # dummy channel keeps the kernel signature fixed
        feat = jnp.zeros((B, C, N2), jnp.float32)
        cfeat = jnp.zeros((B, C, N1), jnp.float32)
    D = 3 + 2 * C
    Dp = -(-D // 16) * 16      # pad channel axis to bf16 sublane tile (full-width stores)

    # ---- cheap channel-axis prep (XLA-fused; only the tiny (B,3,N2) slab is transposed) ----
    xyz_pm = jnp.transpose(xyz, (0, 2, 1))                               # (B, N2, 3)
    paug = jnp.concatenate(
        [-2.0 * xyz_pm, jnp.ones((B, N2, 1), jnp.float32),
         jnp.sum(xyz_pm * xyz_pm, axis=-1, keepdims=True)], axis=-1)     # (B, N2, 5)
    qaug = jnp.concatenate(
        [new_xyz, jnp.sum(new_xyz * new_xyz, axis=1, keepdims=True),
         jnp.ones((B, 1, N1), jnp.float32)], axis=1)                     # (B, 5, N1)
    xf = jnp.concatenate(
        [xyz, feat, feat, jnp.zeros((B, Dp - D, N2), jnp.float32)],
        axis=1).astype(jnp.bfloat16)                                     # (B, Dp, N2)
    sub = jnp.concatenate(
        [new_xyz, jnp.zeros((B, C, N1), jnp.float32), cfeat,
         jnp.zeros((B, Dp - D, N1), jnp.float32)], axis=1)               # (B, Dp, N1)

    bs = _pick_rank_block(N2)
    cap = _vmem_capacity_bytes()
    tN1 = _pick_tile_n1(N1, N2, Dp, K, bs, cap, B)
    n_tiles = N1 // tN1
    ws = _working_set_bytes(tN1, N2, Dp, K, bs)
    vmem_limit = int(min(cap * 3 // 4, max(2 * ws, 32 * 1024 * 1024)))

    kernel = functools.partial(_grouper_kernel, radius=float(radius), K=K, block=bs)

    out = pl.pallas_call(
        kernel,
        out_shape=jax.ShapeDtypeStruct((B, K, Dp, N1), jnp.bfloat16),
        grid_spec=pltpu.PrefetchScalarGridSpec(
            num_scalar_prefetch=0,
            grid=(B, n_tiles),
            in_specs=[
                pl.BlockSpec((1, 5, tN1), lambda b, n: (b, 0, n)),     # qaug
                pl.BlockSpec((1, N2, 5), lambda b, n: (b, 0, 0)),      # paug (resident over n)
                pl.BlockSpec((1, Dp, N2), lambda b, n: (b, 0, 0)),     # xf   (resident over n)
                pl.BlockSpec((1, Dp, tN1), lambda b, n: (b, 0, n)),    # sub
            ],
            out_specs=pl.BlockSpec((1, K, Dp, tN1), lambda b, n: (b, 0, 0, n)),
        ),
        compiler_params=pltpu.CompilerParams(
            dimension_semantics=("parallel", "parallel"),
            vmem_limit_bytes=vmem_limit),
        cost_estimate=pl.CostEstimate(
            flops=int(2 * B * N1 * N2 * (5 + bs + K * Dp)),
            transcendentals=0,
            bytes_accessed=int(B * (N2 * 5 * 4 + 5 * N1 * 4 + Dp * N2 * 2
                                    + Dp * N1 * 4 + K * Dp * N1 * 2))),
    )(qaug, paug, xf, sub)

    # (B, K, Dp, N1) bf16 -> drop the channel pad, restore the PyTorch
    # (B, D, N1, K) layout (transpose runs on bf16 = half the traffic), widen
    # to f32 for the module's output dtype; the bands are then plain slices.
    out = jnp.transpose(out[:, :, :D, :], (0, 2, 3, 1)).astype(jnp.float32)
    group_xyz = out[:, :3]
    if feature is not None:
        group_feature = out if use_xyz else out[:, 3:]
    else:
        group_feature = group_xyz
    return group_feature, group_xyz


def _reference(new_xyz, xyz, cfeat, feat, use_xyz, radius, K):
    """Pure-JAX reference with the same ball-query semantics."""
    B, _, N1 = new_xyz.shape
    N2 = xyz.shape[2]
    p = jnp.transpose(new_xyz, (0, 2, 1))                          # (B,N1,3)
    q = jnp.transpose(xyz, (0, 2, 1))                              # (B,N2,3)
    d2 = (jnp.sum(p * p, -1)[:, :, None] + jnp.sum(q * q, -1)[:, None, :]
          - 2.0 * jnp.einsum("bic,bjc->bij", p, q))
    keyed = jnp.where(d2 < radius * radius,
                      jnp.arange(N2, dtype=jnp.int32)[None, None, :], N2)
    order = jnp.sort(keyed, axis=-1)[:, :, :K]                     # first K by index
    first = order[:, :, :1]
    any_hit = first < N2
    idx = jnp.where(order < N2, order, jnp.where(any_hit, first, 0))
    bidx = jnp.arange(B)[:, None, None]
    gxyz = jnp.where(any_hit[..., None], q[bidx, idx], 0.0)                    # (B,N1,K,3)
    gfeat = jnp.where(any_hit[..., None],
                      jnp.transpose(feat, (0, 2, 1))[bidx, idx], 0.0)          # (B,N1,K,C)
    group_xyz = jnp.transpose(gxyz, (0, 3, 1, 2)) - new_xyz[:, :, :, None]
    gfeat_cm = jnp.transpose(gfeat, (0, 3, 1, 2))
    gfeat2 = gfeat_cm - cfeat[:, :, :, None]
    if use_xyz:
        gf = jnp.concatenate([group_xyz, gfeat_cm, gfeat2], axis=1)
    else:
        gf = jnp.concatenate([gfeat_cm, gfeat2], axis=1)
    return gf, group_xyz


if __name__ == "__main__":
    key = jax.random.PRNGKey(0)
    B, N1, N2, C, K = 2, 8, 16, 4, 4
    radius = 0.5

    k1, k2 = jax.random.split(key, 2)
    xyz = jax.random.uniform(k1, (B, 3, N2), dtype=jnp.float32)
    # centroids taken from the point set (mimics FPS output) -> neighbours exist
    new_xyz = xyz[:, :, :N1]
    feature = jax.random.normal(k2, (B, C, N2), dtype=jnp.float32)
    centroid_feature = feature[:, :, :N1]

    group_feature, group_xyz = edge_query_grouper(
        new_xyz, xyz, centroid_feature, feature, True,
        radius=radius, num_neighbours=K)
    jax.block_until_ready((group_feature, group_xyz))

    assert group_feature.shape == (B, 3 + 2 * C, N1, K)
    assert group_xyz.shape == (B, 3, N1, K)
    assert bool(jnp.all(jnp.isfinite(group_feature)))

    # value check against a pure-JAX reference (bf16 gather/output -> loose tolerance)
    ref_gf, ref_gx = _reference(new_xyz, xyz, centroid_feature, feature, True,
                                radius, K)
    assert bool(jnp.allclose(group_xyz, ref_gx, atol=3e-2, rtol=3e-2)), \
        float(jnp.max(jnp.abs(group_xyz - ref_gx)))
    assert bool(jnp.allclose(group_feature, ref_gf, atol=3e-2, rtol=3e-2)), \
        float(jnp.max(jnp.abs(group_feature - ref_gf)))
    print("KERNEL_OK")
</pallas_src>

<mosaic_0001>
module attributes {stable_mosaic.version = 11 : i64} {
  func.func @_grouper_kernel(%arg0: i32, %arg1: i32, %arg2: memref<1x5x8xf32, #tpu.memory_space<vmem>>, %arg3: memref<1x16x5xf32, #tpu.memory_space<vmem>>, %arg4: memref<1x16x16xbf16, #tpu.memory_space<vmem>>, %arg5: memref<1x16x8xf32, #tpu.memory_space<vmem>>, %arg6: memref<1x4x16x8xbf16, #tpu.memory_space<vmem>>) attributes {dimension_semantics = [#tpu.dimension_semantics<parallel>, #tpu.dimension_semantics<parallel>], iteration_bounds = array<i64: 2, 1>, scalar_prefetch = 0 : i64, scratch_operands = 0 : i64, tpu.core_type = #tpu.core_type<tc>, window_params = [{transform_indices = @transform_0, window_bounds = array<i64: 1, 5, 8>}, {transform_indices = @transform_1, window_bounds = array<i64: 1, 16, 5>}, {transform_indices = @transform_2, window_bounds = array<i64: 1, 16, 16>}, {transform_indices = @transform_3, window_bounds = array<i64: 1, 16, 8>}, {transform_indices = @transform_4, window_bounds = array<i64: 1, 4, 16, 8>}]} {
    %c0 = arith.constant 0 : index
    %c0_0 = arith.constant 0 : index
    %c0_1 = arith.constant 0 : index
    %0 = vector.load %arg2[%c0, %c0_0, %c0_1] : memref<1x5x8xf32, #tpu.memory_space<vmem>>, vector<1x5x8xf32>
    %1 = vector.shape_cast %0 : vector<1x5x8xf32> to vector<5x8xf32>
    %c0_2 = arith.constant 0 : index
    %c0_3 = arith.constant 0 : index
    %c0_4 = arith.constant 0 : index
    %2 = vector.load %arg3[%c0_2, %c0_3, %c0_4] : memref<1x16x5xf32, #tpu.memory_space<vmem>>, vector<1x16x5xf32>
    %3 = vector.shape_cast %2 : vector<1x16x5xf32> to vector<16x5xf32>
    %c0_5 = arith.constant 0 : index
    %c0_6 = arith.constant 0 : index
    %c0_7 = arith.constant 0 : index
    %4 = vector.load %arg4[%c0_5, %c0_6, %c0_7] : memref<1x16x16xbf16, #tpu.memory_space<vmem>>, vector<1x16x16xbf16>
    %5 = vector.shape_cast %4 : vector<1x16x16xbf16> to vector<16x16xbf16>
    %c0_8 = arith.constant 0 : index
    %c0_9 = arith.constant 0 : index
    %c0_10 = arith.constant 0 : index
    %6 = vector.load %arg5[%c0_8, %c0_9, %c0_10] : memref<1x16x8xf32, #tpu.memory_space<vmem>>, vector<1x16x8xf32>
    %7 = vector.shape_cast %6 : vector<1x16x8xf32> to vector<16x8xf32>
    %cst = arith.constant dense<0.000000e+00> : vector<16x8xf32>
    %8 = tpu.matmul %3, %1, %cst {dimension_numbers = #tpu.dot_dimension_numbers<[1], [0], [0], [1], [0, 0, 1, 1], [], []>} : vector<16x5xf32>, vector<5x8xf32>, vector<16x8xf32> -> vector<16x8xf32>
    %cst_11 = arith.constant 2.500000e-01 : f32
    %9 = vector.broadcast %cst_11 : f32 to vector<16x8xf32>
    %10 = arith.cmpf olt, %8, %9 : vector<16x8xf32>
    %cst_12 = arith.constant 1.000000e+00 : f32
    %cst_13 = arith.constant 0.000000e+00 : f32
    %11 = vector.broadcast %cst_12 : f32 to vector<16x8xf32>
    %12 = vector.broadcast %cst_13 : f32 to vector<16x8xf32>
    %13 = arith.select %10, %11, %12 : vector<16x8xi1>, vector<16x8xf32>
    %14 = arith.truncf %13 : vector<16x8xf32> to vector<16x8xbf16>
    %15 = tpu.iota {dimensions = array<i32: 0>} : vector<16x16xi32>
    %16 = tpu.iota {dimensions = array<i32: 1>} : vector<16x16xi32>
    %17 = arith.cmpi sle, %16, %15 : vector<16x16xi32>
    %cst_14 = arith.constant 1.000000e+00 : f32
    %cst_15 = arith.constant 0.000000e+00 : f32
    %18 = vector.broadcast %cst_14 : f32 to vector<16x16xf32>
    %19 = vector.broadcast %cst_15 : f32 to vector<16x16xf32>
    %20 = arith.select %17, %18, %19 : vector<16x16xi1>, vector<16x16xf32>
    %21 = arith.truncf %20 : vector<16x16xf32> to vector<16x16xbf16>
    %cst_16 = arith.constant 0.000000e+00 : f32
    %22 = vector.broadcast %cst_16 : f32 to vector<1x8xf32>
    %cst_17 = arith.constant dense<0.000000e+00> : vector<16x8xf32>
    %23 = tpu.matmul %21, %14, %cst_17 {dimension_numbers = #tpu.dot_dimension_numbers<[1], [0], [0], [1], [0, 0, 1, 1], [], []>} : vector<16x16xbf16>, vector<16x8xbf16>, vector<16x8xf32> -> vector<16x8xf32>
    %24 = vector.broadcast %22 : vector<1x8xf32> to vector<16x8xf32>
    %25 = arith.addf %23, %24 : vector<16x8xf32>
    %cst_18 = arith.constant dense<0xFF800000> : vector<8xf32>
    %26 = vector.multi_reduction <maximumf>, %25, %cst_18 [0] : vector<16x8xf32> to vector<8xf32>
    %27 = vector.shape_cast %26 : vector<8xf32> to vector<1x8xf32>
    %cst_19 = arith.constant 0.000000e+00 : f32
    %28 = vector.broadcast %cst_19 : f32 to vector<16x8xf32>
    %29 = arith.select %10, %25, %28 : vector<16x8xi1>, vector<16x8xf32>
    %cst_20 = arith.constant 1.000000e+00 : f32
    %30 = vector.broadcast %cst_20 : f32 to vector<16x8xf32>
    %31 = arith.cmpf oeq, %29, %30 : vector<16x8xf32>
    %cst_21 = arith.constant 1.000000e+00 : f32
    %cst_22 = arith.constant 0.000000e+00 : f32
    %32 = vector.broadcast %cst_21 : f32 to vector<16x8xf32>
    %33 = vector.broadcast %cst_22 : f32 to vector<16x8xf32>
    %34 = arith.select %31, %32, %33 : vector<16x8xi1>, vector<16x8xf32>
    %35 = arith.truncf %34 : vector<16x8xf32> to vector<16x8xbf16>
    %cst_23 = arith.constant dense<0.000000e+00> : vector<16x8xf32>
    %36 = tpu.matmul %5, %35, %cst_23 {dimension_numbers = #tpu.dot_dimension_numbers<[1], [0], [0], [1], [0, 0, 1, 1], [], []>} : vector<16x16xbf16>, vector<16x8xbf16>, vector<16x8xf32> -> vector<16x8xf32>
    %37 = arith.subf %36, %7 : vector<16x8xf32>
    %38 = arith.truncf %37 : vector<16x8xf32> to vector<16x8xbf16>
    %c0_24 = arith.constant 0 : index
    %c0_25 = arith.constant 0 : index
    %c0_26 = arith.constant 0 : index
    %c0_27 = arith.constant 0 : index
    %39 = vector.load %arg6[%c0_24, %c0_25, %c0_26, %c0_27] : memref<1x4x16x8xbf16, #tpu.memory_space<vmem>>, vector<1x1x16x8xbf16>
    %40 = vector.shape_cast %39 : vector<1x1x16x8xbf16> to vector<16x8xbf16>
    %41 = vector.shape_cast %38 : vector<16x8xbf16> to vector<1x1x16x8xbf16>
    tpu.vector_store %arg6[%c0_24, %c0_25, %c0_26, %c0_27], %41 {strides = array<i32>} : memref<1x4x16x8xbf16, #tpu.memory_space<vmem>>, vector<1x1x16x8xbf16>,
    %cst_28 = arith.constant 2.000000e+00 : f32
    %42 = vector.broadcast %cst_28 : f32 to vector<16x8xf32>
    %43 = arith.cmpf oeq, %29, %42 : vector<16x8xf32>
    %cst_29 = arith.constant 1.000000e+00 : f32
    %cst_30 = arith.constant 0.000000e+00 : f32
    %44 = vector.broadcast %cst_29 : f32 to vector<16x8xf32>
    %45 = vector.broadcast %cst_30 : f32 to vector<16x8xf32>
    %46 = arith.select %43, %44, %45 : vector<16x8xi1>, vector<16x8xf32>
    %47 = arith.truncf %46 : vector<16x8xf32> to vector<16x8xbf16>
    %cst_31 = arith.constant dense<0.000000e+00> : vector<16x8xf32>
    %48 = tpu.matmul %5, %47, %cst_31 {dimension_numbers = #tpu.dot_dimension_numbers<[1], [0], [0], [1], [0, 0, 1, 1], [], []>} : vector<16x16xbf16>, vector<16x8xbf16>, vector<16x8xf32> -> vector<16x8xf32>
    %cst_32 = arith.constant 2.000000e+00 : f32
    %49 = vector.broadcast %cst_32 : f32 to vector<1x8xf32>
    %50 = arith.cmpf oge, %27, %49 : vector<1x8xf32>
    %51 = vector.shape_cast %50 : vector<1x8xi1> to vector<1x8xi1>
    %52 = vector.broadcast %51 : vector<1x8xi1> to vector<16x8xi1>
    %53 = arith.select %52, %48, %36 : vector<16x8xi1>, vector<16x8xf32>
    %54 = arith.subf %53, %7 : vector<16x8xf32>
    %55 = arith.truncf %54 : vector<16x8xf32> to vector<16x8xbf16>
    %c0_33 = arith.constant 0 : index
    %c1 = arith.constant 1 : index
    %c0_34 = arith.constant 0 : index
    %c0_35 = arith.constant 0 : index
    %56 = vector.load %arg6[%c0_33, %c1, %c0_34, %c0_35] : memref<1x4x16x8xbf16, #tpu.memory_space<vmem>>, vector<1x1x16x8xbf16>
    %57 = vector.shape_cast %56 : vector<1x1x16x8xbf16> to vector<16x8xbf16>
    %58 = vector.shape_cast %55 : vector<16x8xbf16> to vector<1x1x16x8xbf16>
    tpu.vector_store %arg6[%c0_33, %c1, %c0_34, %c0_35], %58 {strides = array<i32>} : memref<1x4x16x8xbf16, #tpu.memory_space<vmem>>, vector<1x1x16x8xbf16>,
    %cst_36 = arith.constant 3.000000e+00 : f32
    %59 = vector.broadcast %cst_36 : f32 to vector<16x8xf32>
    %60 = arith.cmpf oeq, %29, %59 : vector<16x8xf32>
    %cst_37 = arith.constant 1.000000e+00 : f32
    %cst_38 = arith.constant 0.000000e+00 : f32
    %61 = vector.broadcast %cst_37 : f32 to vector<16x8xf32>
    %62 = vector.broadcast %cst_38 : f32 to vector<16x8xf32>
    %63 = arith.select %60, %61, %62 : vector<16x8xi1>, vector<16x8xf32>
    %64 = arith.truncf %63 : vector<16x8xf32> to vector<16x8xbf16>
    %cst_39 = arith.constant dense<0.000000e+00> : vector<16x8xf32>
    %65 = tpu.matmul %5, %64, %cst_39 {dimension_numbers = #tpu.dot_dimension_numbers<[1], [0], [0], [1], [0, 0, 1, 1], [], []>} : vector<16x16xbf16>, vector<16x8xbf16>, vector<16x8xf32> -> vector<16x8xf32>
    %cst_40 = arith.constant 3.000000e+00 : f32
    %66 = vector.broadcast %cst_40 : f32 to vector<1x8xf32>
    %67 = arith.cmpf oge, %27, %66 : vector<1x8xf32>
    %68 = vector.shape_cast %67 : vector<1x8xi1> to vector<1x8xi1>
    %69 = vector.broadcast %68 : vector<1x8xi1> to vector<16x8xi1>
    %70 = arith.select %69, %65, %36 : vector<16x8xi1>, vector<16x8xf32>
    %71 = arith.subf %70, %7 : vector<16x8xf32>
    %72 = arith.truncf %71 : vector<16x8xf32> to vector<16x8xbf16>
    %c0_41 = arith.constant 0 : index
    %c2 = arith.constant 2 : index
    %c0_42 = arith.constant 0 : index
    %c0_43 = arith.constant 0 : index
    %73 = vector.load %arg6[%c0_41, %c2, %c0_42, %c0_43] : memref<1x4x16x8xbf16, #tpu.memory_space<vmem>>, vector<1x1x16x8xbf16>
    %74 = vector.shape_cast %73 : vector<1x1x16x8xbf16> to vector<16x8xbf16>
    %75 = vector.shape_cast %72 : vector<16x8xbf16> to vector<1x1x16x8xbf16>
    tpu.vector_store %arg6[%c0_41, %c2, %c0_42, %c0_43], %75 {strides = array<i32>} : memref<1x4x16x8xbf16, #tpu.memory_space<vmem>>, vector<1x1x16x8xbf16>,
    %cst_44 = arith.constant 4.000000e+00 : f32
    %76 = vector.broadcast %cst_44 : f32 to vector<16x8xf32>
    %77 = arith.cmpf oeq, %29, %76 : vector<16x8xf32>
    %cst_45 = arith.constant 1.000000e+00 : f32
    %cst_46 = arith.constant 0.000000e+00 : f32
    %78 = vector.broadcast %cst_45 : f32 to vector<16x8xf32>
    %79 = vector.broadcast %cst_46 : f32 to vector<16x8xf32>
    %80 = arith.select %77, %78, %79 : vector<16x8xi1>, vector<16x8xf32>
    %81 = arith.truncf %80 : vector<16x8xf32> to vector<16x8xbf16>
    %cst_47 = arith.constant dense<0.000000e+00> : vector<16x8xf32>
    %82 = tpu.matmul %5, %81, %cst_47 {dimension_numbers = #tpu.dot_dimension_numbers<[1], [0], [0], [1], [0, 0, 1, 1], [], []>} : vector<16x16xbf16>, vector<16x8xbf16>, vector<16x8xf32> -> vector<16x8xf32>
    %cst_48 = arith.constant 4.000000e+00 : f32
    %83 = vector.broadcast %cst_48 : f32 to vector<1x8xf32>
    %84 = arith.cmpf oge, %27, %83 : vector<1x8xf32>
    %85 = vector.shape_cast %84 : vector<1x8xi1> to vector<1x8xi1>
    %86 = vector.broadcast %85 : vector<1x8xi1> to vector<16x8xi1>
    %87 = arith.select %86, %82, %36 : vector<16x8xi1>, vector<16x8xf32>
    %88 = arith.subf %87, %7 : vector<16x8xf32>
    %89 = arith.truncf %88 : vector<16x8xf32> to vector<16x8xbf16>
    %c0_49 = arith.constant 0 : index
    %c3 = arith.constant 3 : index
    %c0_50 = arith.constant 0 : index
    %c0_51 = arith.constant 0 : index
    %90 = vector.load %arg6[%c0_49, %c3, %c0_50, %c0_51] : memref<1x4x16x8xbf16, #tpu.memory_space<vmem>>, vector<1x1x16x8xbf16>
    %91 = vector.shape_cast %90 : vector<1x1x16x8xbf16> to vector<16x8xbf16>
    %92 = vector.shape_cast %89 : vector<16x8xbf16> to vector<1x1x16x8xbf16>
    tpu.vector_store %arg6[%c0_49, %c3, %c0_50, %c0_51], %92 {strides = array<i32>} : memref<1x4x16x8xbf16, #tpu.memory_space<vmem>>, vector<1x1x16x8xbf16>,
    return
  }
  func.func @transform_0(%arg0: i32, %arg1: i32) -> (i32, i32, i32) {
    %c0_i32 = arith.constant 0 : i32
    %c0_i32_0 = arith.constant 0 : i32
    return %arg0, %c0_i32, %arg1 : i32, i32, i32
  }
  func.func @transform_1(%arg0: i32, %arg1: i32) -> (i32, i32, i32) {
    %c0_i32 = arith.constant 0 : i32
    %c0_i32_0 = arith.constant 0 : i32
    %c0_i32_1 = arith.constant 0 : i32
    return %arg0, %c0_i32, %c0_i32_0 : i32, i32, i32
  }
  func.func @transform_2(%arg0: i32, %arg1: i32) -> (i32, i32, i32) {
    %c0_i32 = arith.constant 0 : i32
    %c0_i32_0 = arith.constant 0 : i32
    %c0_i32_1 = arith.constant 0 : i32
    return %arg0, %c0_i32, %c0_i32_0 : i32, i32, i32
  }
  func.func @transform_3(%arg0: i32, %arg1: i32) -> (i32, i32, i32) {
    %c0_i32 = arith.constant 0 : i32
    %c0_i32_0 = arith.constant 0 : i32
    return %arg0, %c0_i32, %arg1 : i32, i32, i32
  }
  func.func @transform_4(%arg0: i32, %arg1: i32) -> (i32, i32, i32, i32) {
    %c0_i32 = arith.constant 0 : i32
    %c0_i32_0 = arith.constant 0 : i32
    %c0_i32_1 = arith.constant 0 : i32
    return %arg0, %c0_i32, %c0_i32_0, %arg1 : i32, i32, i32, i32
  }
}

</mosaic_0001>

<bundles_post_ra>
// kernel: tpu_custom_call.1
= control target key start
LH: loop header
LB: loop body
LE: loop exit
PB: predicated region body
PF: predicated region fallthrough
CT: control target
= control target key end

     0   :  { %s1033_s15 = smov 0   ;;  %s1035_s16 = smov 0   ;;  %s1117_s0 = inlined_call_operand.vmem [shape: f32[2,5,8], index: 0, kind: input, shape index: {}]   ;;  %s1118_s1 = inlined_call_operand.vmem [shape: f32[2,16,5], index: 1, kind: input, shape index: {}]   ;;  %s1119_s2 = inlined_call_operand.vmem [shape: bf16[2,16,16], index: 2, kind: input, shape index: {}]   ;;  %s1120_s3 = inlined_call_operand.vmem [shape: f32[2,16,8], index: 3, kind: input, shape index: {}]   ;;  %s1121_s4 = inlined_call_operand.vmem [shape: bf16[2,4,16,8], index: 4, kind: output, shape index: {}]  }
   0x1   :  { %s1037_s17 = smov 0  }
   0x2 LB: > { %s26_s18 = sadd.s32 1, %s999_s16  ;;  %p848_p0 = scmp.ge.s32.totalorder %s1003_s17, 1  ;;  %s1003_s17 = sphi %s1037_s17, %s14_s17   ;;  %s999_s16 = sphi %s1035_s16, %s1123_s16   ;;  %s995_s15 = sphi %s1033_s15, %s1122_s15  }
   0x3   : > { %p28_p1 = scmp.ge.s32.totalorder %s26_s18, 2  ;;  %p215_p2 = scmp.lt.s32.totalorder %s1003_s17, 3 }
   0x5   : > { %s1125_s18 = smov (%p28_p1, %s26_s18), 0  ;;  %p216_p3 = pnand %p848_p0, %p215_p2 }
   0x6   : > { %p264_p4 = scmp.lt.s32.totalorder (!%p216_p3), %s995_s15, 1  ;;  %vm312_vm0 = vcmask (!%p216_p3), 1044480   ;;  %vm305_vm1 = vcmask (!%p216_p3), 39936   ;;  %v1005_v3 = vmov (!%p216_p3), 0.0   ;;  %vm1006_vm2 = vmmov (!%p216_p3), 0  }
   0x7   : > { %219 = sbr.rel (%p216_p3) target bundleno = 687 (0x2af), region = 36  ;;  %923 = vmatprep.subr.bf16.mxu1 (!%p216_p3), %v1005_v3  ;;  %925 = vmatprep.mubr.msk.bf16.mxu1 (!%p216_p3), %vm1006_vm2, %v1005_v3  ;;  %v396_v4 = vlaneseq (!%p216_p3)  ;;  %v1007_v13 = vmov (!%p216_p3), 1.0|1.0   ;;  %vm406_vm8 = vcmask (!%p216_p3), 130048   ;;  %vm451_vm9 = vcmask (!%p216_p3), 64512  }
   0x9   : > { %v397_v5 = vshrl.u32 (!%p216_p3), %v396_v4, 7  ;;  %v400_v7 = vand.u32 (!%p216_p3), 127, %v396_v4 }
   0xb   : > { %v398_v6 = vadd.s32 (!%p216_p3), 8, %v397_v5  ;;  %vm401_vm3 = vcmp.le.s32.totalorder (!%p216_p3), %v400_v7, %v397_v5 }
   0xc   : > { %v403_v9 = vsel (!%p216_p3), %vm401_vm3, 1.0, %v1005_v3 }
   0xd   : > { %vm402_vm4 = vcmp.le.s32.totalorder (!%p216_p3), %v400_v7, %v398_v6 }
   0xe   : > { %s1127_s15 = smov (!%p264_p4, %s995_s15), 1  ;;  %v404_v10 = vsel %vm402_vm4, 1.0, %v1005_v3 }
   0xf   : > { %s849_s19 = sshll.u32 %s1127_s15, 3  ;;  %s893_s26 = sshll.u32 %s1127_s15, 4  ;;  %v405_v12 = vpack.c.bf16 %v404_v10, %v403_v9 }
  0x10   : > { %s270_s22 = scalar_lea.vmem %s1117_s0, %s849_s19  ;;  %s1060_s25 = scalar_lea.vmem %s1119_s2, %s849_s19 }
  0x11   : > { %v298_v0 = vld [vmem:[%s270_s22] sm:$0x1f]  ;;  %s275_s29 = scalar_lea.vmem %s1118_s1, %s893_s26  ;;  %s288_s6 = scalar_lea.vmem %s1120_s3, %s893_s26 }
  0x12   : > { %918 = vmatprep.subr.msk.mxu0 %vm312_vm0, %v298_v0  ;;  %v299_v1 = vld [vmem:[%s275_s29] sm:$0xff]  ;;  %v300_v2 = vld [vmem:[%s275_s29 + $0x8] sm:$0xff]  ;;  %s896_s7 = sshll.u32 %s1127_s15, 5 }
  0x13   : > { %919 = vmatpush3.msk.msra.mxu0 %vm312_vm0, %v298_v0  ;;  %920 = vmatprep.mubr.msk.f32.mxu0 %vm305_vm1, %v299_v1  ;;  %v980_v23 = vld [vmem:[%s1060_s25] sm:$0xff]   ;;  %v304_v31 = vld [vmem:[%s288_s6 + $0x8] sm:$0xff]  ;;  %s1090_s10 = scalar_lea.vmem %s1121_s4, %s896_s7 }
  0x14   : > { %921 = vmatmul.mubr.msk.f32.vlgmr.msra.gmra.mrb[0].mxu0 %vm305_vm1, %v300_v2  ;;  %929 = vmatprep.subr.bf16.mxu0 %v1005_v3  ;;  %v303_v30 = vld [vmem:[%s288_s6] sm:$0xff] }
  0x15   : > { %931 = vmatprep.mubr.msk.bf16.mxu0 %vm1006_vm2, %v1005_v3 }
  0xe7   : > { %v922_v8 = vpop.f32.mrb[0].mxu0 }
  0xe8   : > { %vm392_vm5 = vcmp.lt.f32.partialorder %v922_v8, 0.25  ;;  %v382_v11 = vpop.f32.mrb[1].mxu0 }
  0xe9   : > { %vm391_vm6 = vcmp.lt.f32.partialorder %v382_v11, 0.25 }
  0xea   : > { %vm861_vm7 = vmpackc.low %vm392_vm5, %vm391_vm6 }
  0xeb   : > { %924 = vmatpush3.bf16.msk.msra.mxu1 %vm861_vm7, %v1007_v13 }
  0xec   : > { %935 = vmatprep.subr.bf16.mxu1 %v1005_v3 }
  0xee   : > { %926 = vmatmul.mubr.msk.bf16.vlgmr.msra.gmra.mrb[0].mxu1 %vm406_vm8, %v405_v12 }
  0xef   : > { %937 = vmatprep.mubr.msk.bf16.mxu1 %vm1006_vm2, %v1005_v3 }
 0x1c1   : > { %v444_v14 = vpop.f32.mrb[0].mxu1 }
 0x1c2   : > { %v461_v15 = vsel %vm391_vm6, %v444_v14, 0.0  ;;  %v927_v16 = vpop.f32.mrb[1].mxu1  ;;  %v452_v18 = vsel %vm451_vm9, %v444_v14, -inf }
 0x1c3   : > { %v447_v17 = vpop.f32.mrb[2].mxu1  ;;  %vm463_vm10 = vcmp.eq.f32.partialorder %v461_v15, 1.0  ;;  %vm530_vm14 = vcmp.eq.f32.partialorder %v461_v15, 2.0  ;;  %vm594_vm1 = vcmp.eq.f32.partialorder %v461_v15, 3.0  ;;  %vm658_vm4 = vcmp.eq.f32.partialorder %v461_v15, 4.0 }
 0x1c4   : > { %v453_v19 = vsel %vm451_vm9, %v447_v17, -inf  ;;  %v462_v20 = vsel %vm392_vm5, %v447_v17, 0.0  ;;  %v928_v21 = vpop.f32.mrb[3].mxu1  ;;  %vm527_vm5 = vcmask 60416  }
 0x1c5   : > { %v454_v22 = vmax.f32 %v452_v18, %v453_v19  ;;  %vm464_vm11 = vcmp.eq.f32.partialorder %v462_v20, 1.0  ;;  %vm531_vm12 = vcmp.eq.f32.partialorder %v462_v20, 2.0  ;;  %vm595_vm13 = vcmp.eq.f32.partialorder %v462_v20, 3.0 }
 0x1c6   : > { %vm659_vm15 = vcmp.eq.f32.partialorder %v462_v20, 4.0  ;;  %vm865_vm0 = vmpackc.low %vm464_vm11, %vm463_vm10 }
 0x1c7   : > { %930 = vmatpush3.bf16.msk.msra.mxu0 %vm865_vm0, %v1007_v13  ;;  %vm870_vm3 = vmpackc.low %vm531_vm12, %vm530_vm14  ;;  %v455_v24 = vrot.slane %v454_v22, 4 }
 0x1c8   : > { %936 = vmatpush3.bf16.msk.msra.mxu1 %vm870_vm3, %v1007_v13  ;;  %941 = vmatprep.subr.bf16.mxu0 %v1005_v3  ;;  %vm877_vm6 = vmpackc.low %vm595_vm13, %vm594_vm1 }
 0x1c9   : > { %947 = vmatprep.subr.bf16.mxu1 %v1005_v3  ;;  %vm884_vm7 = vmpackc.low %vm659_vm15, %vm658_vm4  ;;  %v456_v25 = vmax.f32 %v454_v22, %v455_v24 }
 0x1ca   : > { %932 = vmatmul.mubr.msk.bf16.vlgmr.msra.gmra.mrb[4].mxu0 %vm406_vm8, %v980_v23 }
 0x1cb   : > { %938 = vmatmul.mubr.msk.bf16.vlgmr.msra.gmra.mrb[4].mxu1 %vm406_vm8, %v980_v23  ;;  %942 = vmatpush3.bf16.msk.msra.mxu0 %vm877_vm6, %v1007_v13  ;;  %v457_v26 = vrot.slane %v456_v25, 2 }
 0x1cc   : > { %948 = vmatpush3.bf16.msk.msra.mxu1 %vm884_vm7, %v1007_v13  ;;  %943 = vmatprep.mubr.msk.bf16.mxu0 %vm1006_vm2, %v1005_v3 }
 0x1cd   : > { %949 = vmatprep.mubr.msk.bf16.mxu1 %vm1006_vm2, %v1005_v3  ;;  %v458_v27 = vmax.f32 %v456_v25, %v457_v26 }
 0x1cf   : > { %v459_v28 = vrot.slane %v458_v27, 1 }
 0x1d1   : > { %v460_v29 = vmax.f32 %v458_v27, %v459_v28 }
 0x1d2   : > { %944 = vmatmul.mubr.msk.bf16.vlgmr.msra.gmra.mrb[8].mxu0 %vm406_vm8, %v980_v23 }
 0x1d3   : > { %950 = vmatmul.mubr.msk.bf16.vlgmr.msra.gmra.mrb[8].mxu1 %vm406_vm8, %v980_v23  ;;  %vm576_vm2 = vcmp.ge.f32.partialorder %v460_v29, 2.0  ;;  %vm640_vm8 = vcmp.ge.f32.partialorder %v460_v29, 3.0  ;;  %vm704_vm9 = vcmp.ge.f32.partialorder %v460_v29, 4.0 }
 0x29d   : > { %v510_v32 = vpop.f32.mrb[4].mxu0 }
 0x29e   : > { %v517_v33 = vsub.f32 %v510_v32, %v303_v30  ;;  %v569_v34 = vpop.f32.mrb[4].mxu1  ;;  %v933_v35 = vpop.f32.mrb[5].mxu0 }
 0x29f   : > { %v579_v36 = vsel %vm576_vm2, %v569_v34, %v510_v32  ;;  %v939_v37 = vpop.f32.mrb[5].mxu1  ;;  %v513_v38 = vpop.f32.mrb[6].mxu0 }
 0x2a0   : > { %v897_v39 = vpack.c.bf16 %v517_v33, %v517_v33  ;;  %v581_v40 = vsub.f32 %v579_v36, %v303_v30  ;;  %v518_v41 = vsub.f32 %v513_v38, %v304_v31  ;;  %v572_v42 = vpop.f32.mrb[6].mxu1  ;;  %v934_v43 = vpop.f32.mrb[7].mxu0 }
 0x2a1   : > { %v580_v44 = vsel %vm576_vm2, %v572_v42, %v513_v38  ;;  %v940_v45 = vpop.f32.mrb[7].mxu1 }
 0x2a2   : > { %528 = vst.msk [vmem:[%s1090_s10] sm:$0xf] %vm527_vm5, %v897_v39  ;;  %v899_v46 = vpack.c.bf16 %v581_v40, %v581_v40  ;;  %v898_v47 = vpack.c.bf16 %v518_v41, %v518_v41  ;;  %v582_v48 = vsub.f32 %v580_v44, %v304_v31 }
 0x2a4   : > { %875 = vst.msk [vmem:[%s1090_s10 + $0x8] sm:$0xf] %vm527_vm5, %v899_v46  ;;  %529 = vst.msk [vmem:[%s1090_s10 + $0x4] sm:$0xf] %vm527_vm5, %v898_v47  ;;  %v900_v49 = vpack.c.bf16 %v582_v48, %v582_v48 }
 0x2a5   : > { %v633_v50 = vpop.f32.mrb[8].mxu0 }
 0x2a6   : > { %876 = vst.msk [vmem:[%s1090_s10 + $0xc] sm:$0xf] %vm527_vm5, %v900_v49  ;;  %v643_v51 = vsel %vm640_vm8, %v633_v50, %v510_v32  ;;  %v697_v52 = vpop.f32.mrb[8].mxu1  ;;  %v945_v53 = vpop.f32.mrb[9].mxu0 }
 0x2a7   : > { %v645_v54 = vsub.f32 %v643_v51, %v303_v30  ;;  %v707_v55 = vsel %vm704_vm9, %v697_v52, %v510_v32  ;;  %v951_v56 = vpop.f32.mrb[9].mxu1  ;;  %v636_v57 = vpop.f32.mrb[10].mxu0 }
 0x2a8   : > { %v709_v58 = vsub.f32 %v707_v55, %v303_v30  ;;  %v644_v59 = vsel %vm640_vm8, %v636_v57, %v513_v38  ;;  %v700_v60 = vpop.f32.mrb[10].mxu1  ;;  %v946_v61 = vpop.f32.mrb[11].mxu0 }
 0x2a9   : > { %v901_v62 = vpack.c.bf16 %v645_v54, %v645_v54  ;;  %v646_v63 = vsub.f32 %v644_v59, %v304_v31  ;;  %v708_v0 = vsel %vm704_vm9, %v700_v60, %v513_v38  ;;  %v952_v1 = vpop.f32.mrb[11].mxu1 }
 0x2aa   : > { %v903_v2 = vpack.c.bf16 %v709_v58, %v709_v58  ;;  %v710_v3 = vsub.f32 %v708_v0, %v304_v31 }
 0x2ab   : > { %882 = vst.msk [vmem:[%s1090_s10 + $0x10] sm:$0xf] %vm527_vm5, %v901_v62  ;;  %v902_v4 = vpack.c.bf16 %v646_v63, %v646_v63 }
 0x2ac   : > { %889 = vst.msk [vmem:[%s1090_s10 + $0x18] sm:$0xf] %vm527_vm5, %v903_v2  ;;  %v904_v5 = vpack.c.bf16 %v710_v3, %v710_v3 }
 0x2ad   : > { %883 = vst.msk [vmem:[%s1090_s10 + $0x14] sm:$0xf] %vm527_vm5, %v902_v4 }
 0x2ae   : > { %890 = vst.msk [vmem:[%s1090_s10 + $0x1c] sm:$0xf] %vm527_vm5, %v904_v5 }
 0x2af PF: > { %s14_s17 = sadd.s32 1, %s1003_s17   ;;  %s1122_s15 = smov %s999_s16 }
 0x2b0   : > { %p11_p5 = scmp.ge.s32.totalorder %s14_s17, 4   ;;  %s1123_s16 = smov %s1125_s18 }
 0x2b2   :  { %13 = sbr.rel (!%p11_p5) target bundleno = 2 (0x2), region = 78 }

</bundles_post_ra>
